<compile_context>
chip_gen: v7x
topology: tpu7x:2x2x1
jax: 0.10.0
libtpu: 0.0.40
codegen_flags: <defaults>
</compile_context>

<pallas_src>
import jax
import jax.numpy as jnp
from jax.experimental import pallas as pl
from jax.experimental.pallas import tpu as pltpu


_LANE = 128     # lane width: last-dim multiple for lane-dense MXU tiles
_SUBLANE = 8    # f32 sublane multiple for the second-to-last dim


def _round_up(v, m):
    return ((v + m - 1) // m) * m


def _detect_tpu():
    """Generation-aware VMEM budget + TensorCore count (heuristic, guarded)."""
    vmem_cap = 64 * 1024 * 1024
    num_cores = 1
    try:
        info = pltpu.get_tpu_info()
        vmem_cap = int(getattr(info, "vmem_capacity_bytes", vmem_cap))
        # v7x: 64 MiB VMEM per TensorCore, 2 TCs/chip; v5e/v6e: 128 MiB, 1 TC.
        num_cores = 2 if vmem_cap <= 64 * 1024 * 1024 else 1
    except Exception:
        pass
    if vmem_cap >= 96 * 1024 * 1024:        # v5e / v6e: use the headroom
        budget, limit = 96 * 1024 * 1024, 100 * 1024 * 1024
    else:                                    # v7x (or unknown): conservative
        budget, limit = 40 * 1024 * 1024, 48 * 1024 * 1024
    return num_cores, budget, limit


_NUM_TC, _VMEM_BUDGET, _VMEM_LIMIT = _detect_tpu()


def _pad_last(a, to):
    pad = to - a.shape[-1]
    return a if pad <= 0 else jnp.pad(a, ((0, 0), (0, pad)))


def _const_param_spec(shape, single_buffer):
    """Single full-array block with a constant index_map: the pipeline fetches
    it once (step 0) and never re-DMAs it.  With single_buffer=True it is also
    requested single-buffered via pl.Buffered(1) (grid-invariant data needs no
    double buffer); off by default here because the params are tiny (<10 KiB)
    and buffer-count-1 pipelining support varies across JAX versions."""
    index_map = lambda i: (0,) * len(shape)
    if single_buffer and hasattr(pl, "Buffered"):
        try:
            return pl.BlockSpec(shape, index_map, pipeline_mode=pl.Buffered(1))
        except Exception:
            pass
    return pl.BlockSpec(shape, index_map)


def make_ffnet_kernel(activations, feature_widths, out_dim):
    """Fused MLP kernel.

    activations: tuple of length (num_hidden + 1). Hidden layer i applies
    activations[i] ('ReLU' / 'Sigmoid' / anything-else = identity). The final
    (output) layer applies sigmoid ONLY if activations[-1] == 'Sigmoid'
    (matching the PyTorch forward exactly).
    feature_widths: real widths [in_dim, h1, ..., out_dim].
    """
    n_layers = len(activations)
    widths_p = [_round_up(w, _LANE) for w in feature_widths]

    def kernel(*refs):
        x_ref = refs[0]
        param_refs = refs[1:1 + 2 * n_layers]
        o_ref = refs[-1]

        h = x_ref[...]
        if h.dtype != jnp.float32:
            h = h.astype(jnp.float32)
        # Lane-pad activations in VMEM only (no HBM cost; vregs are 128-lane
        # wide regardless, so this adds no real compute).
        h = _pad_last(h, widths_p[0])

        for li in range(n_layers):
            w = param_refs[2 * li][...]
            b = param_refs[2 * li + 1][...].astype(jnp.float32)   # (1, n)
            kp, np_ = widths_p[li], widths_p[li + 1]
            # Zero-pad weight/bias tiles in VMEM so the MXU matmul is fully
            # lane/sublane dense; padded rows/cols are zero so real lanes are
            # unchanged (sigmoid(0)=0.5 on padded lanes only ever multiplies
            # zero weight rows downstream and is sliced off before the store).
            wp = jnp.pad(w, ((0, kp - w.shape[0]), (0, np_ - w.shape[1])))
            bp = jnp.pad(b, ((0, 0), (0, np_ - b.shape[1])))
            lhs = h if h.dtype == wp.dtype else h.astype(wp.dtype)
            h = jnp.dot(lhs, wp, preferred_element_type=jnp.float32) + bp
            if li < n_layers - 1:
                act = activations[li]
                if act == 'ReLU':
                    h = jnp.maximum(h, 0.0)
                elif act == 'Sigmoid':
                    h = jax.nn.sigmoid(h)

        # Epilogue on the REAL output lanes only: narrow sigmoid, narrow store.
        out = h[:, :out_dim]
        if activations[-1] == 'Sigmoid':
            out = jax.nn.sigmoid(out)
        o_ref[...] = out.astype(o_ref.dtype)

    return kernel


def ffnet_forward(x, params, activations, *, block_batch=None,
                  max_block_batch=1024, vmem_budget_bytes=None,
                  vmem_limit_bytes=None, num_tensorcores=None,
                  single_buffer_params=False):
    """Fused MLP forward.

    params: list of (W, b) with W shape (in, out) [f32 or bf16], b shape (1, out).
    """
    B, in_dim = x.shape
    n_layers = len(params)
    assert n_layers == len(activations)
    out_dim = params[-1][0].shape[1]

    if vmem_budget_bytes is None:
        vmem_budget_bytes = _VMEM_BUDGET
    if vmem_limit_bytes is None:
        vmem_limit_bytes = _VMEM_LIMIT
    if num_tensorcores is None:
        num_tensorcores = _NUM_TC

    widths = [in_dim] + [w.shape[1] for (w, _) in params]
    widths_p = [_round_up(w, _LANE) for w in widths]
    param_bytes = sum(w.size * w.dtype.itemsize + b.size * b.dtype.itemsize
                      for (w, b) in params)
    # VMEM occupied by params + their in-kernel lane-padded copies. Constant
    # index_map means they are DMA'd once -> budget them once, not 2x.
    padded_param_vmem = sum(4 * widths_p[li] * widths_p[li + 1] + 4 * widths_p[li + 1]
                            for li in range(n_layers))
    fixed_vmem = param_bytes + padded_param_vmem

    # ---- batch tile selection ------------------------------------------------
    if block_batch is None:
        per_row_bytes = 4 * (2 * in_dim            # x tile, double-buffered
                             + 2 * out_dim         # out tile, double-buffered
                             + 2 * max(widths_p))  # padded intermediates
        avail = max(vmem_budget_bytes - fixed_vmem, _SUBLANE * per_row_bytes)
        bb_cap = min(max_block_batch, avail // per_row_bytes)
        bb_cap = max(_SUBLANE, (bb_cap // _SUBLANE) * _SUBLANE)
        B_sub = _round_up(B, _SUBLANE)
        if num_tensorcores <= 1 or B_sub <= _SUBLANE:
            # Single TensorCore (v5e/v6e): one full-batch tile when it fits --
            # splitting only doubles the fixed ~0.35us per-step overhead.
            block_batch = min(bb_cap, B_sub)
        else:
            # v7x (2 TensorCores): even step count so both cores get equal
            # work; >=4 steps for large batches so per-core prefetch overlaps.
            steps = max(2, _round_up(pl.cdiv(B_sub, bb_cap), 2))
            if B_sub >= 128 * _SUBLANE and steps < 4:
                steps = 4
            block_batch = _round_up(pl.cdiv(B_sub, steps), _SUBLANE)
    block_batch = max(_SUBLANE, _round_up(block_batch, _SUBLANE))

    # Pad only the batch axis, and only when the batch is not a tile multiple.
    B_pad = _round_up(B, block_batch)
    x_p = x if B_pad == B else jnp.pad(x, ((0, B_pad - B), (0, 0)))
    grid = (B_pad // block_batch,)

    kernel = make_ffnet_kernel(tuple(activations), widths, out_dim)

    # x tiled over batch at its NATURAL width (full last dim satisfies the
    # (8,128) rule); params as single full-array blocks (DMA'd once).
    in_specs = [pl.BlockSpec((block_batch, in_dim), lambda i: (i, 0))]
    flat_params = []
    for (w, b) in params:
        in_specs.append(_const_param_spec(w.shape, single_buffer_params))
        in_specs.append(_const_param_spec(b.shape, single_buffer_params))
        flat_params.extend([w, b])

    # Output at its REAL width: narrow writeback DMA.
    out_specs = pl.BlockSpec((block_batch, out_dim), lambda i: (i, 0))

    flops = 2 * B_pad * sum(w.shape[0] * w.shape[1] for (w, _) in params)
    transcendentals = sum(B_pad * widths[li + 1]
                          for li, act in enumerate(activations)
                          if act == 'Sigmoid')
    bytes_accessed = (B_pad * in_dim * x.dtype.itemsize
                      + B_pad * out_dim * 4 + param_bytes)

    out = pl.pallas_call(
        kernel,
        out_shape=jax.ShapeDtypeStruct((B_pad, out_dim), jnp.float32),
        grid_spec=pltpu.PrefetchScalarGridSpec(
            num_scalar_prefetch=0,
            grid=grid,
            in_specs=in_specs,
            out_specs=out_specs,
        ),
        compiler_params=pltpu.CompilerParams(
            dimension_semantics=("parallel",),
            vmem_limit_bytes=vmem_limit_bytes,
        ),
        cost_estimate=pl.CostEstimate(
            flops=flops,
            transcendentals=transcendentals,
            bytes_accessed=bytes_accessed,
        ),
    )(x_p, *flat_params)

    # Strip batch padding only (feature dims are already exact).
    return out if B_pad == B else out[:B]


def init_ffnet_params(key, input_size, hidden_sizes, output_size, activations,
                      dtype=jnp.float32):
    """Deterministic init mimicking the PyTorch module's __init__ scheme."""
    sizes_in = [input_size] + list(hidden_sizes)
    sizes_out = list(hidden_sizes) + [output_size]
    params = []
    for i, (fan_in, fan_out) in enumerate(zip(sizes_in, sizes_out)):
        key, sub = jax.random.split(key)
        if activations[i] == 'ReLU':
            # kaiming_uniform_ (relu gain): bound = sqrt(6 / fan_in)
            bound = jnp.sqrt(6.0 / fan_in)
        else:
            # xavier_uniform_: bound = sqrt(6 / (fan_in + fan_out))
            bound = jnp.sqrt(6.0 / (fan_in + fan_out))
        w = jax.random.uniform(sub, (fan_in, fan_out), jnp.float32,
                               minval=-bound, maxval=bound).astype(dtype)
        b = jnp.zeros((1, fan_out), jnp.float32)  # bias.data.fill_(0.0)
        params.append((w, b))
    return params


def ffnet_reference(x, params, activations):
    """Pure-JAX reference replicating the PyTorch forward."""
    h = x.astype(jnp.float32)
    n_layers = len(params)
    for li, (w, b) in enumerate(params):
        h = h @ w.astype(jnp.float32) + b
        act = activations[li]
        if li < n_layers - 1:
            if act == 'ReLU':
                h = jnp.maximum(h, 0.0)
            elif act == 'Sigmoid':
                h = jax.nn.sigmoid(h)
        else:
            if act == 'Sigmoid':
                h = jax.nn.sigmoid(h)
    return h


if __name__ == "__main__":
    # Small config consistent with the module:
    # FFNet(input_size=16, hidden_sizes=[32, 32], output_size=1,
    #       activations=['ReLU', 'ReLU', 'Sigmoid'])
    input_size = 16
    hidden_sizes = [32, 32]
    output_size = 1
    activations = ('ReLU', 'ReLU', 'Sigmoid')   # tuple -> hashable for jit

    key = jax.random.PRNGKey(0)
    key, kx1, kx2 = jax.random.split(key, 3)
    params = init_ffnet_params(key, input_size, hidden_sizes, output_size,
                               activations)

    # jit the wrapper so the (rare) batch pad / final slice fuse around the
    # pallas_call instead of being separate eager dispatches.
    fwd = jax.jit(ffnet_forward, static_argnames=("activations",))

    # Test 1: tiny batch (single grid step, no padding at all).
    x1 = jax.random.normal(kx1, (8, input_size), jnp.float32)
    out1 = jax.block_until_ready(fwd(x1, params, activations=activations))
    ref1 = ffnet_reference(x1, params, activations)
    assert out1.shape == (8, output_size)
    assert jnp.allclose(out1, ref1, atol=1e-5, rtol=1e-5), (
        f"mismatch(1): max abs err {jnp.max(jnp.abs(out1 - ref1))}")

    # Test 2: non-multiple batch -> exercises batch padding (+ multi-step grid
    # on 2-TensorCore chips).
    x2 = jax.random.normal(kx2, (50, input_size), jnp.float32)
    out2 = jax.block_until_ready(fwd(x2, params, activations=activations))
    ref2 = ffnet_reference(x2, params, activations)
    assert out2.shape == (50, output_size)
    assert jnp.allclose(out2, ref2, atol=1e-5, rtol=1e-5), (
        f"mismatch(2): max abs err {jnp.max(jnp.abs(out2 - ref2))}")

    print("KERNEL_OK")
</pallas_src>

<mosaic_0001>
module attributes {stable_mosaic.version = 11 : i64} {
  func.func @kernel(%arg0: i32, %arg1: memref<8x16xf32, #tpu.memory_space<vmem>>, %arg2: memref<16x32xf32, #tpu.memory_space<vmem>>, %arg3: memref<1x32xf32, #tpu.memory_space<vmem>>, %arg4: memref<32x32xf32, #tpu.memory_space<vmem>>, %arg5: memref<1x32xf32, #tpu.memory_space<vmem>>, %arg6: memref<32x1xf32, #tpu.memory_space<vmem>>, %arg7: memref<1x1xf32, #tpu.memory_space<vmem>>, %arg8: memref<8x1xf32, #tpu.memory_space<vmem>>) attributes {dimension_semantics = [#tpu.dimension_semantics<parallel>], iteration_bounds = array<i64: 1>, scalar_prefetch = 0 : i64, scratch_operands = 0 : i64, tpu.core_type = #tpu.core_type<tc>, window_params = [{transform_indices = @transform_0, window_bounds = array<i64: 8, 16>}, {pipeline_mode = #tpu.pipeline_mode<synchronous>, transform_indices = @transform_1, window_bounds = array<i64: 16, 32>}, {pipeline_mode = #tpu.pipeline_mode<synchronous>, transform_indices = @transform_2, window_bounds = array<i64: 1, 32>}, {pipeline_mode = #tpu.pipeline_mode<synchronous>, transform_indices = @transform_3, window_bounds = array<i64: 32, 32>}, {pipeline_mode = #tpu.pipeline_mode<synchronous>, transform_indices = @transform_4, window_bounds = array<i64: 1, 32>}, {pipeline_mode = #tpu.pipeline_mode<synchronous>, transform_indices = @transform_5, window_bounds = array<i64: 32, 1>}, {pipeline_mode = #tpu.pipeline_mode<synchronous>, transform_indices = @transform_6, window_bounds = array<i64: 1, 1>}, {transform_indices = @transform_7, window_bounds = array<i64: 8, 1>}]} {
    %c0 = arith.constant 0 : index
    %c0_0 = arith.constant 0 : index
    %0 = vector.load %arg1[%c0, %c0_0] : memref<8x16xf32, #tpu.memory_space<vmem>>, vector<8x16xf32>
    %c0_i32 = arith.constant 0 : i32
    %1 = arith.sitofp %c0_i32 : i32 to f32
    %2 = vector.broadcast %1 : f32 to vector<8x112xf32>
    %3 = tpu.concatenate %0, %2 in 1 : vector<8x16xf32>, vector<8x112xf32> -> vector<8x128xf32>
    %c0_1 = arith.constant 0 : index
    %c0_2 = arith.constant 0 : index
    %4 = vector.load %arg2[%c0_1, %c0_2] : memref<16x32xf32, #tpu.memory_space<vmem>>, vector<16x32xf32>
    %c0_3 = arith.constant 0 : index
    %c0_4 = arith.constant 0 : index
    %5 = vector.load %arg3[%c0_3, %c0_4] : memref<1x32xf32, #tpu.memory_space<vmem>>, vector<1x32xf32>
    %c0_i32_5 = arith.constant 0 : i32
    %6 = arith.sitofp %c0_i32_5 : i32 to f32
    %7 = vector.broadcast %6 : f32 to vector<112x32xf32>
    %8 = tpu.concatenate %4, %7 in 0 : vector<16x32xf32>, vector<112x32xf32> -> vector<128x32xf32>
    %9 = vector.broadcast %6 : f32 to vector<128x96xf32>
    %10 = tpu.concatenate %8, %9 in 1 : vector<128x32xf32>, vector<128x96xf32> -> vector<128x128xf32>
    %c0_i32_6 = arith.constant 0 : i32
    %11 = arith.sitofp %c0_i32_6 : i32 to f32
    %12 = vector.broadcast %11 : f32 to vector<1x96xf32>
    %13 = tpu.concatenate %5, %12 in 1 : vector<1x32xf32>, vector<1x96xf32> -> vector<1x128xf32>
    %cst = arith.constant dense<0.000000e+00> : vector<8x128xf32>
    %14 = tpu.matmul %3, %10, %cst {dimension_numbers = #tpu.dot_dimension_numbers<[1], [0], [0], [1], [0, 0, 1, 1], [], []>} : vector<8x128xf32>, vector<128x128xf32>, vector<8x128xf32> -> vector<8x128xf32>
    %15 = vector.broadcast %13 : vector<1x128xf32> to vector<8x128xf32>
    %16 = arith.addf %14, %15 : vector<8x128xf32>
    %cst_7 = arith.constant 0.000000e+00 : f32
    %17 = vector.broadcast %cst_7 : f32 to vector<8x128xf32>
    %18 = arith.maximumf %16, %17 : vector<8x128xf32>
    %c0_8 = arith.constant 0 : index
    %c0_9 = arith.constant 0 : index
    %19 = vector.load %arg4[%c0_8, %c0_9] : memref<32x32xf32, #tpu.memory_space<vmem>>, vector<32x32xf32>
    %c0_10 = arith.constant 0 : index
    %c0_11 = arith.constant 0 : index
    %20 = vector.load %arg5[%c0_10, %c0_11] : memref<1x32xf32, #tpu.memory_space<vmem>>, vector<1x32xf32>
    %c0_i32_12 = arith.constant 0 : i32
    %21 = arith.sitofp %c0_i32_12 : i32 to f32
    %22 = vector.broadcast %21 : f32 to vector<96x32xf32>
    %23 = tpu.concatenate %19, %22 in 0 : vector<32x32xf32>, vector<96x32xf32> -> vector<128x32xf32>
    %24 = vector.broadcast %21 : f32 to vector<128x96xf32>
    %25 = tpu.concatenate %23, %24 in 1 : vector<128x32xf32>, vector<128x96xf32> -> vector<128x128xf32>
    %c0_i32_13 = arith.constant 0 : i32
    %26 = arith.sitofp %c0_i32_13 : i32 to f32
    %27 = vector.broadcast %26 : f32 to vector<1x96xf32>
    %28 = tpu.concatenate %20, %27 in 1 : vector<1x32xf32>, vector<1x96xf32> -> vector<1x128xf32>
    %cst_14 = arith.constant dense<0.000000e+00> : vector<8x128xf32>
    %29 = tpu.matmul %18, %25, %cst_14 {dimension_numbers = #tpu.dot_dimension_numbers<[1], [0], [0], [1], [0, 0, 1, 1], [], []>} : vector<8x128xf32>, vector<128x128xf32>, vector<8x128xf32> -> vector<8x128xf32>
    %30 = vector.broadcast %28 : vector<1x128xf32> to vector<8x128xf32>
    %31 = arith.addf %29, %30 : vector<8x128xf32>
    %cst_15 = arith.constant 0.000000e+00 : f32
    %32 = vector.broadcast %cst_15 : f32 to vector<8x128xf32>
    %33 = arith.maximumf %31, %32 : vector<8x128xf32>
    %c0_16 = arith.constant 0 : index
    %c0_17 = arith.constant 0 : index
    %34 = vector.load %arg6[%c0_16, %c0_17] : memref<32x1xf32, #tpu.memory_space<vmem>>, vector<32x1xf32>
    %c0_18 = arith.constant 0 : index
    %c0_19 = arith.constant 0 : index
    %35 = vector.load %arg7[%c0_18, %c0_19] : memref<1x1xf32, #tpu.memory_space<vmem>>, vector<1x1xf32>
    %c0_i32_20 = arith.constant 0 : i32
    %36 = arith.sitofp %c0_i32_20 : i32 to f32
    %37 = vector.broadcast %36 : f32 to vector<96x1xf32>
    %38 = tpu.concatenate %34, %37 in 0 : vector<32x1xf32>, vector<96x1xf32> -> vector<128x1xf32>
    %39 = vector.broadcast %36 : f32 to vector<128x127xf32>
    %40 = tpu.concatenate %38, %39 in 1 : vector<128x1xf32>, vector<128x127xf32> -> vector<128x128xf32>
    %c0_i32_21 = arith.constant 0 : i32
    %41 = arith.sitofp %c0_i32_21 : i32 to f32
    %42 = vector.broadcast %41 : f32 to vector<1x127xf32>
    %43 = tpu.concatenate %35, %42 in 1 : vector<1x1xf32>, vector<1x127xf32> -> vector<1x128xf32>
    %cst_22 = arith.constant dense<0.000000e+00> : vector<8x128xf32>
    %44 = tpu.matmul %33, %40, %cst_22 {dimension_numbers = #tpu.dot_dimension_numbers<[1], [0], [0], [1], [0, 0, 1, 1], [], []>} : vector<8x128xf32>, vector<128x128xf32>, vector<8x128xf32> -> vector<8x128xf32>
    %45 = vector.broadcast %43 : vector<1x128xf32> to vector<8x128xf32>
    %46 = arith.addf %44, %45 : vector<8x128xf32>
    %47 = vector.extract_strided_slice %46 {offsets = [0, 0], sizes = [8, 1], strides = [1, 1]} : vector<8x128xf32> to vector<8x1xf32>
    %48 = arith.negf %47 : vector<8x1xf32>
    %49 = math.exp %48 : vector<8x1xf32>
    %cst_23 = arith.constant 1.000000e+00 : f32
    %50 = vector.broadcast %cst_23 : f32 to vector<8x1xf32>
    %51 = arith.addf %50, %49 : vector<8x1xf32>
    %52 = arith.divf %50, %51 : vector<8x1xf32>
    %c0_24 = arith.constant 0 : index
    %c0_25 = arith.constant 0 : index
    %53 = vector.load %arg8[%c0_24, %c0_25] : memref<8x1xf32, #tpu.memory_space<vmem>>, vector<8x1xf32>
    tpu.vector_store %arg8[%c0_24, %c0_25], %52 {strides = array<i32>} : memref<8x1xf32, #tpu.memory_space<vmem>>, vector<8x1xf32>,
    return
  }
  func.func @transform_0(%arg0: i32) -> (i32, i32) {
    %c0_i32 = arith.constant 0 : i32
    %c0_i32_0 = arith.constant 0 : i32
    return %arg0, %c0_i32 : i32, i32
  }
  func.func @transform_1(%arg0: i32) -> (i32, i32) {
    %c0_i32 = arith.constant 0 : i32
    %c0_i32_0 = arith.constant 0 : i32
    %c0_i32_1 = arith.constant 0 : i32
    return %c0_i32, %c0_i32_0 : i32, i32
  }
  func.func @transform_2(%arg0: i32) -> (i32, i32) {
    %c0_i32 = arith.constant 0 : i32
    %c0_i32_0 = arith.constant 0 : i32
    %c0_i32_1 = arith.constant 0 : i32
    return %c0_i32, %c0_i32_0 : i32, i32
  }
  func.func @transform_3(%arg0: i32) -> (i32, i32) {
    %c0_i32 = arith.constant 0 : i32
    %c0_i32_0 = arith.constant 0 : i32
    %c0_i32_1 = arith.constant 0 : i32
    return %c0_i32, %c0_i32_0 : i32, i32
  }
  func.func @transform_4(%arg0: i32) -> (i32, i32) {
    %c0_i32 = arith.constant 0 : i32
    %c0_i32_0 = arith.constant 0 : i32
    %c0_i32_1 = arith.constant 0 : i32
    return %c0_i32, %c0_i32_0 : i32, i32
  }
  func.func @transform_5(%arg0: i32) -> (i32, i32) {
    %c0_i32 = arith.constant 0 : i32
    %c0_i32_0 = arith.constant 0 : i32
    %c0_i32_1 = arith.constant 0 : i32
    return %c0_i32, %c0_i32_0 : i32, i32
  }
  func.func @transform_6(%arg0: i32) -> (i32, i32) {
    %c0_i32 = arith.constant 0 : i32
    %c0_i32_0 = arith.constant 0 : i32
    %c0_i32_1 = arith.constant 0 : i32
    return %c0_i32, %c0_i32_0 : i32, i32
  }
  func.func @transform_7(%arg0: i32) -> (i32, i32) {
    %c0_i32 = arith.constant 0 : i32
    %c0_i32_0 = arith.constant 0 : i32
    return %arg0, %c0_i32 : i32, i32
  }
}

</mosaic_0001>

<bundles_post_ra>
// kernel: ffnet_forward.1
= control target key start
LH: loop header
LB: loop body
LE: loop exit
PB: predicated region body
PF: predicated region fallthrough
CT: control target
= control target key end

     0   :  { %s588_s0 = inlined_call_operand.hbm [shape: f32[8,16], index: 0, kind: input, shape index: {}]   ;;  %s589_s1 = inlined_call_operand.vmem [shape: f32[16,32], index: 1, kind: input, shape index: {}]   ;;  %s590_s2 = inlined_call_operand.hbm [shape: f32[1,32], index: 2, kind: input, shape index: {}]   ;;  %s591_s3 = inlined_call_operand.vmem [shape: f32[32,32], index: 3, kind: input, shape index: {}]   ;;  %s592_s4 = inlined_call_operand.vmem [shape: f32[1,32], index: 4, kind: input, shape index: {}]   ;;  %s593_s5 = inlined_call_operand.vmem [shape: f32[32,1], index: 5, kind: input, shape index: {}]   ;;  %s594_s6 = inlined_call_operand.<no memory space> [shape: f32[1,1], index: 6, kind: input, shape index: {}]   ;;  %s595_s7 = inlined_call_operand.vmem [shape: f32[8,1], index: 7, kind: output, shape index: {}]  }
   0x1   :  { %v12_v0 = vstv %s594_s6 }
   0x2   :  { %13 = vst [vmem:[#allocation2] sm:$0x1] %v12_v0 }
   0x3   :  { %14 = vsyncpa [#allocation4], 0 }
   0x4   :  { %15 = vsyncpa [#allocation6], 0  ;;  %s451_s26 = smov [#allocation3]   ;;  %s452_s28 = smov [#allocation5]  }
   0x5   :  { %s22_s27 = sshll.u32 %s451_s26, 4  ;;  %s34_s29 = sshll.u32 %s452_s28, 4  ;;  %s23_s27 = int_to_ptr.vmem [resolvable:$true] %s22_s27  ;;  %s35_s29 = int_to_ptr.vmem [resolvable:$true] %s34_s29 }
   0x6   :  { %s403_s9 = scalar_lea.hbm %s588_s0, 128 }
   0x7   :  { %p404_p0 = scmp.ne.s32.totalorder %s588_s0, %s403_s9  ;;  %p407_p1 = scmp.lt.u32.totalorder %s403_s9, %s588_s0 }
   0x9   :  { %p409_p2 = pnand %p407_p1, %p404_p0 }
   0xb   :  { %412 = shalt.err (!%p409_p2)
}
   0xc   :  { %s413_s6 = scalar_lea.vmem %s23_s27, 128  ;;  %p418_p4 = scmp.lt.s32.totalorder %s23_s27, %s23_s27 }
   0xd   :  { %p414_p3 = scmp.ne.s32.totalorder %s23_s27, %s413_s6  ;;  %p419_p5 = scmp.lt.s32.totalorder %s413_s6, %s413_s6 }
   0xf   :  { %p420_p6 = por %p419_p5, %p418_p4 }
  0x11   :  { %p421_p7 = pnand %p420_p6, %p414_p3 }
  0x13   :  { %424 = shalt.err (!%p421_p7)
}
  0x14   :  { %25 = dma.hbm_to_vmem [thread:$0]  %s588_s0, 128, %s23_s27, [#allocation4]  }
  0x15   :  { %s425_s18 = scalar_lea.hbm %s590_s2, 16 }
  0x16   :  { %p426_p8 = scmp.ne.s32.totalorder %s590_s2, %s425_s18  ;;  %p429_p9 = scmp.lt.u32.totalorder %s425_s18, %s590_s2 }
  0x18   :  { %p431_p10 = pnand %p429_p9, %p426_p8 }
  0x1a   :  { %434 = shalt.err (!%p431_p10)
}
  0x1b   :  { %s435_s23 = scalar_lea.vmem %s35_s29, 16  ;;  %s439_s24 = scalar_lea.vmem %s35_s29, 32 }
  0x1c   :  { %p436_p11 = scmp.ne.s32.totalorder %s35_s29, %s435_s23  ;;  %p440_p12 = scmp.lt.s32.totalorder %s35_s29, %s35_s29 }
  0x1d   :  { %p441_p13 = scmp.lt.s32.totalorder %s439_s24, %s435_s23 }
  0x1f   :  { %p442_p0 = por %p441_p13, %p440_p12 }
  0x21   :  { %p443_p1 = pnand %p442_p0, %p436_p11 }
  0x23   :  { %446 = shalt.err (!%p443_p1)
}
  0x24   :  { %37 = dma.hbm_to_vmem [thread:$0]  %s590_s2, 16, %s35_s29, [#allocation6]  }
  0x25   :  { %447 = dma.done.wait [#allocation4], 128  }
  0x26   :  { %448 = vsyncadd [#allocation4], 4294967168 }
  0x27   :  { %449 = dma.done.wait [#allocation6], 16  }
  0x28   :  { %450 = vsyncadd [#allocation6], 4294967280  ;;  %v453_v1 = vmov 0.0|0.0   ;;  %vm454_vm0 = vmmov 0   ;;  %v455_v2 = vmov 0.0   ;;  %vm58_vm1 = vcmask 261120  }
  0x29   :  { %374 = vmatprep.subr.bf16.mxu0 %v453_v1  ;;  %349 = vmatprep.mubr.msk.f32.mxu0 %vm454_vm0, %v455_v2  ;;  %v55_v3 = vld [vmem:[%s589_s1] sm:$0xff]  ;;  %v56_v4 = vld [vmem:[%s589_s1 + $0x8] sm:$0xff]  ;;  %vm533_vm2 = vmpackc.low %vm58_vm1, %vm58_vm1  ;;  %vm53_vm3 = vcmask 130048   ;;  %vm227_vm4 = vcmask 7168   ;;  %v62_v18 = vlaneseq }
  0x2a   :  { %378 = vmatprep.subr.bf16.mxu1 %v453_v1  ;;  %360 = vmatprep.mubr.msk.f32.mxu1 %vm454_vm0, %v455_v2  ;;  %v375_v6 = vpack.c.bf16 %v56_v4, %v55_v3  ;;  %v137_v7 = vld [vmem:[%s591_s3] sm:$0xff]  ;;  %v138_v8 = vld [vmem:[%s591_s3 + $0x8] sm:$0xff]  ;;  %v139_v11 = vld [vmem:[%s591_s3 + $0x10] sm:$0xff] }
  0x2b   :  { %v379_v9 = vpack.c.bf16 %v138_v8, %v137_v7  ;;  %v52_v10 = vld [vmem:[#allocation3] sm:$0xff]  ;;  %v140_v12 = vld [vmem:[%s591_s3 + $0x18] sm:$0xff]  ;;  %vm564_vm5 = vmpackc.low %vm227_vm4, %vm227_vm4  ;;  %v63_v19 = vshrl.u32 %v62_v18, 7 }
  0x2c   :  { %377 = vmatpush3.bf16.msk.msra.mxu0 %vm533_vm2, %v375_v6  ;;  %v383_v13 = vpack.c.bf16 %v140_v12, %v139_v11  ;;  %v222_v14 = vld [vmem:[%s593_s5] sm:$0xff]  ;;  %v223_v15 = vld [vmem:[%s593_s5 + $0x8] sm:$0xff]  ;;  %v224_v28 = vld [vmem:[%s593_s5 + $0x10] sm:$0xff] }
  0x2d   :  { %381 = vmatpush3.bf16.msk.msra.mxu1 %vm533_vm2, %v379_v9  ;;  %386 = vmatprep.subr.bf16.mxu0 %v453_v1  ;;  %v387_v16 = vpack.c.bf16 %v223_v15, %v222_v14  ;;  %v57_v20 = vld [vmem:[#allocation5] sm:$0x1]  ;;  %v64_v21 = vsub.s32 0, %v63_v19  ;;  %v225_v29 = vld [vmem:[%s593_s5 + $0x18] sm:$0xff]  ;;  %v141_v31 = vld [vmem:[%s592_s4] sm:$0x1] }
  0x2e   :  { %382 = vmatprep.subr.bf16.mxu1 %v453_v1  ;;  %v61_v22 = vsel %vm58_vm1, %v57_v20, 0.0  ;;  %v391_v30 = vpack.c.bf16 %v225_v29, %v224_v28  ;;  %v146_v32 = vsel %vm58_vm1, %v141_v31, 0.0  ;;  %v226_v38 = vld [vmem:[#allocation2] sm:$0x1] }
  0x2f   :  { %350 = vmatmul.mubr.msk.f32.vlgmr.msra.gmra.mrb[0].mxu0 %vm53_vm3, %v52_v10  ;;  %v65_v23 = vrot.slane %v61_v22, %v64_v21  ;;  %v150_v33 = vrot.slane %v146_v32, %v64_v21  ;;  %v232_v39 = vsel %vm227_vm4, %v226_v38, 0.0 }
  0x30   :  { %371 = vmatprep.mubr.msk.f32.mxu0 %vm454_vm0, %v455_v2  ;;  %389 = vmatpush3.bf16.msk.msra.mxu0 %vm564_vm5, %v387_v16  ;;  %v236_v40 = vrot.slane %v232_v39, %v64_v21 }
  0x31   :  { %385 = vmatpush3.bf16.msk.msra.mxu1 %vm533_vm2, %v383_v13  ;;  %390 = vmatprep.subr.bf16.mxu0 %v453_v1 }
  0x34   :  { %393 = vmatpush3.bf16.msk.msra.mxu0 %vm564_vm5, %v391_v30 }
 0x102   :  { %v132_v24 = vpop.f32.mrb[0].mxu0 }
 0x103   :  { %v133_v25 = vadd.f32 %v132_v24, %v65_v23  ;;  %v351_v26 = vpop.f32.mrb[1].mxu0 }
 0x105   :  { %v136_v27 = vmax.f32 %v133_v25, 0.0 }
 0x107   :  { %361 = vmatmul.mubr.f32.vlgmr.msra.gmra.mrb[0].mxu1 %v136_v27 }
 0x1da   :  { %v217_v34 = vpop.f32.mrb[0].mxu1 }
 0x1db   :  { %v218_v35 = vadd.f32 %v217_v34, %v150_v33  ;;  %v362_v36 = vpop.f32.mrb[1].mxu1 }
 0x1dd   :  { %v221_v37 = vmax.f32 %v218_v35, 0.0 }
 0x1df   :  { %372 = vmatmul.mubr.f32.vlgmr.msra.gmra.mrb[2].mxu0 %v221_v37 }
 0x2b2   :  { %v303_v41 = vpop.f32.mrb[2].mxu0 }
 0x2b3   :  { %v304_v42 = vadd.f32 %v303_v41, %v236_v40  ;;  %v373_v43 = vpop.f32.mrb[3].mxu0 }
 0x2b5   :  { %v331_v44 = vmul.f32 -1.442695, %v304_v42 }
 0x2b7   :  { %399 = vpow2.f32 %v331_v44 }
 0x2c1   :  { %v400_v45 = vpop.eup %399 }
 0x2c2   :  { %v310_v46 = vadd.f32 1.0, %v400_v45 }
 0x2c4   :  { %401 = vrcp.f32 %v310_v46 }
 0x2ce   :  { %v402_v47 = vpop.eup %401 }
 0x2cf   :  { %313 = vst.msk [vmem:[%s595_s7] sm:$0xff] %vm227_vm4, %v402_v47 }
 0x2d0   :  { %318 = vsyncpa [#allocation4], 1 }
 0x2d1   :  { %319 = vsyncpa [#allocation6], 1 }

</bundles_post_ra>
